<compile_context>
chip_gen: v5e
topology: v5e:2x2
jax: 0.10.0
libtpu: 0.0.40
codegen_flags: <defaults>
</compile_context>

<pallas_src>
import jax
import jax.numpy as jnp
from jax.experimental import pallas as pl
from jax.experimental.pallas import tpu as pltpu


def rbert_kernel(
    x_ref,       # (TB, TS, H)  last_hidden_state tile (compute dtype)
    e1_ref,      # (TB, TS)     entity-1 mask tile
    e2_ref,      # (TB, TS)     entity-2 mask tile
    wp_ref,      # (H, H)       pooler weight (in, out), resident
    bp_ref,      # (1, H)       pooler bias
    wc_ref,      # (H, L)       cls_fc folded into classify slab 0
    w1_ref,      # (H, L)       e1_fc  folded into classify slab 1
    w2_ref,      # (H, L)       e2_fc  folded into classify slab 2
    be_ref,      # (1, L)       folded bias
    out_ref,     # (TB, L)      logits (resident across the seq grid axis)
    cls_ref,     # (TB, H)      f32 scratch: CLS token row
    acc1_ref,    # (TB, H)      f32 scratch: sum(e1_mask * x)
    acc2_ref,    # (TB, H)      f32 scratch: sum(e2_mask * x)
    cnt1_ref,    # (TB, 1)      f32 scratch: sum(e1_mask)
    cnt2_ref,    # (TB, 1)      f32 scratch: sum(e2_mask)
):
    k = pl.program_id(1)
    nk = pl.num_programs(1)

    @pl.when(k == 0)
    def _init():
        acc1_ref[...] = jnp.zeros_like(acc1_ref)
        acc2_ref[...] = jnp.zeros_like(acc2_ref)
        cnt1_ref[...] = jnp.zeros_like(cnt1_ref)
        cnt2_ref[...] = jnp.zeros_like(cnt2_ref)
        # CLS token only exists in the first seq tile: grab it once.
        cls_ref[...] = x_ref[:, 0, :].astype(jnp.float32)

    # VPU path: mask broadcast-multiply + sublane reduce, f32 accumulation.
    # (No MXU contraction -> the kernel stays HBM-bound, not weight-push bound.)
    xf = x_ref[...].astype(jnp.float32)
    e1f = e1_ref[...].astype(jnp.float32)
    e2f = e2_ref[...].astype(jnp.float32)

    acc1_ref[...] += jnp.sum(e1f[:, :, None] * xf, axis=1)
    acc2_ref[...] += jnp.sum(e2f[:, :, None] * xf, axis=1)
    cnt1_ref[...] += jnp.sum(e1f, axis=-1, keepdims=True)
    cnt2_ref[...] += jnp.sum(e2f, axis=-1, keepdims=True)

    @pl.when(k == nk - 1)
    def _finalize():
        # NOTE: like the PyTorch model, an all-zero entity mask yields inf/nan.
        # (pl.reciprocal(approx=True) would move this to the EUP, but exact
        # division keeps the f32 path bit-tight; finalize runs once per tile.)
        x1_avg = acc1_ref[...] * pl.reciprocal(cnt1_ref[...], approx=False)
        x2_avg = acc2_ref[...] * pl.reciprocal(cnt2_ref[...], approx=False)

        # BERT pooler: tanh(Linear(x[:, 0, :]))  (f32, tanh on the EUP)
        h = jnp.tanh(
            jnp.dot(cls_ref[...], wp_ref[...],
                    preferred_element_type=jnp.float32)
            + bp_ref[...])

        # dropout = identity (eval); branch FCs are pre-folded into the
        # classifier slabs, so concat + (B,3H)x(3H,L) becomes three small
        # (TB,H)x(H,L) dots sharing one accumulator.
        logits = (
            jnp.dot(h, wc_ref[...], preferred_element_type=jnp.float32)
            + jnp.dot(x1_avg, w1_ref[...], preferred_element_type=jnp.float32)
            + jnp.dot(x2_avg, w2_ref[...], preferred_element_type=jnp.float32)
            + be_ref[...])
        out_ref[...] = logits.astype(out_ref.dtype)


def _lane_pad(n):
    return ((n + 127) // 128) * 128


def _sub_pad(n):
    return ((n + 7) // 8) * 8


def _pick_tiles(B, S, itemsize):
    """Tiles that satisfy the (8,128) BlockSpec rule and divide the arrays.

    * Keep >= 2 batch tiles whenever B >= 16 so the "parallel" batch grid axis
      can be sharded across v7x's two TensorCores.
    * Cap the seq tile so (double-buffered x tile + f32 product temporaries)
      stays well inside v7x's 64 MiB VMEM: 512 for bf16 streaming, 256 for f32.
    """
    tb = 8 if (B >= 16 and B % 8 == 0) else B
    ts_cap = 512 if itemsize <= 2 else 256
    if S <= ts_cap:
        ts = S
    else:
        ts = S  # fallback: no seq tiling if nothing divides evenly
        for cand in (ts_cap, 256, 128):
            if cand <= ts_cap and S % cand == 0:
                ts = cand
                break
    return tb, ts


def _vmem_estimate(tb, ts, H, L, itemsize):
    """Rough scoped-VMEM need: double-buffered inputs/outputs, resident
    weights (x2 buffers), scratch, and the f32 mask*x product temporaries."""
    Hp, Lp = _lane_pad(H), _lane_pad(L)
    tbp, tsp = _sub_pad(tb), _sub_pad(ts)
    x_tile = tb * tsp * Hp * itemsize * 2
    m_tile = 2 * tbp * _lane_pad(ts) * itemsize * 2
    weights = (H * Hp + 8 * Hp + 3 * H * Lp + 8 * Lp) * 4 * 2
    scratch = (3 * tbp * Hp + 2 * tbp * 128) * 4
    out = tbp * Lp * 4 * 2
    temps = 2 * tb * tsp * Hp * 4          # f32 mask*x intermediates
    return x_tile + m_tile + weights + scratch + out + temps


def rbert_forward(last_hidden, e1_mask, e2_mask, params, *,
                  compute_dtype=jnp.bfloat16):
    """last_hidden: (B, S, H); e*_mask: (B, S). Returns (B, L) f32 logits.

    compute_dtype controls the dtype of the streamed (B,S,H) tensor and masks
    (bf16 is the default and halves the dominant HBM read); accumulation,
    tanh and the head matmuls stay in f32.
    """
    B, S, H = last_hidden.shape
    L = params["b_out"].shape[-1]
    f32 = jnp.float32

    # --- trace-time weight prep: exact Linear∘Linear folding (dropout = id) --
    w_out = params["w_out"].astype(f32)                       # (3H, L)
    w_pool = params["w_pool"].astype(f32)
    b_pool = params["b_pool"].astype(f32)
    w_cls_eff = params["w_cls"].astype(f32) @ w_out[:H]       # (H, L)
    w_e1_eff = params["w_e1"].astype(f32) @ w_out[H:2 * H]    # (H, L)
    w_e2_eff = params["w_e2"].astype(f32) @ w_out[2 * H:]     # (H, L)
    b_eff = (params["b_cls"].astype(f32) @ w_out[:H]
             + params["b_e1"].astype(f32) @ w_out[H:2 * H]
             + params["b_e2"].astype(f32) @ w_out[2 * H:]
             + params["b_out"].astype(f32))                   # (1, L)

    x_c = last_hidden.astype(compute_dtype)
    e1_c = e1_mask.astype(compute_dtype)
    e2_c = e2_mask.astype(compute_dtype)

    itemsize = jnp.dtype(compute_dtype).itemsize
    tb, ts = _pick_tiles(B, S, itemsize)
    grid = (B // tb, pl.cdiv(S, ts))

    const = lambda i, k: (0, 0)   # weights: DMA'd once, resident across grid
    in_specs = [
        pl.BlockSpec((tb, ts, H), lambda i, k: (i, k, 0)),    # x tile
        pl.BlockSpec((tb, ts), lambda i, k: (i, k)),          # e1 tile
        pl.BlockSpec((tb, ts), lambda i, k: (i, k)),          # e2 tile
        pl.BlockSpec((H, H), const),                          # w_pool
        pl.BlockSpec((1, H), const),                          # b_pool
        pl.BlockSpec((H, L), const),                          # w_cls_eff
        pl.BlockSpec((H, L), const),                          # w_e1_eff
        pl.BlockSpec((H, L), const),                          # w_e2_eff
        pl.BlockSpec((1, L), const),                          # b_eff
    ]
    # Output block is un-tiled in L and resident across the seq axis.
    out_spec = pl.BlockSpec((tb, L), lambda i, k: (i, 0))

    # Explicit scoped-VMEM budget: never below the 32 MiB default, never above
    # v7x's 64 MiB physical VMEM.
    vmem_limit = int(min(max(_vmem_estimate(tb, ts, H, L, itemsize)
                             + (8 << 20), 32 << 20), 64 << 20))

    cost = pl.CostEstimate(
        flops=4 * B * S * H + 2 * B * H * H + 3 * 2 * B * H * L,
        transcendentals=B * H,
        bytes_accessed=((B * S * H + 2 * B * S) * itemsize
                        + 4 * (H * H + H + 3 * H * L + L) + 4 * B * L),
    )

    return pl.pallas_call(
        rbert_kernel,
        out_shape=jax.ShapeDtypeStruct((B, L), jnp.float32),
        grid_spec=pltpu.PrefetchScalarGridSpec(
            num_scalar_prefetch=0,
            grid=grid,
            in_specs=in_specs,
            out_specs=out_spec,
            scratch_shapes=[
                pltpu.VMEM((tb, H), jnp.float32),   # cls row
                pltpu.VMEM((tb, H), jnp.float32),   # e1 sum
                pltpu.VMEM((tb, H), jnp.float32),   # e2 sum
                pltpu.VMEM((tb, 1), jnp.float32),   # e1 count
                pltpu.VMEM((tb, 1), jnp.float32),   # e2 count
            ],
        ),
        compiler_params=pltpu.CompilerParams(
            dimension_semantics=("parallel", "arbitrary"),
            vmem_limit_bytes=vmem_limit),
        cost_estimate=cost,
    )(x_c, e1_c, e2_c, w_pool, b_pool, w_cls_eff, w_e1_eff, w_e2_eff, b_eff)


def make_params(key, hidden, num_labels):
    """Deterministic init. Weights stored already transposed to (in, out)."""
    ks = jax.random.split(key, 10)
    scale = 0.02

    def lin(k, fan_in, fan_out):
        return scale * jax.random.normal(k, (fan_in, fan_out), jnp.float32)

    return {
        "w_pool": lin(ks[0], hidden, hidden),
        "b_pool": jnp.zeros((1, hidden), jnp.float32),
        "w_cls": lin(ks[1], hidden, hidden),
        "b_cls": scale * jax.random.normal(ks[2], (1, hidden), jnp.float32),
        "w_e1": lin(ks[3], hidden, hidden),
        "b_e1": scale * jax.random.normal(ks[4], (1, hidden), jnp.float32),
        "w_e2": lin(ks[5], hidden, hidden),
        "b_e2": scale * jax.random.normal(ks[6], (1, hidden), jnp.float32),
        "w_out": lin(ks[7], 3 * hidden, num_labels),
        "b_out": scale * jax.random.normal(ks[8], (1, num_labels), jnp.float32),
    }


if __name__ == "__main__":
    B, S, H, V, L = 2, 8, 32, 100, 4   # batch, seq, hidden, vocab, num_labels

    key = jax.random.PRNGKey(0)
    k_emb, k_ids, k_params = jax.random.split(key, 3)

    # --- stand-in "encoder": deterministic embedding lookup (plain JAX glue) --
    embedding = 0.1 * jax.random.normal(k_emb, (V, H), jnp.float32)
    token_ids = jax.random.randint(k_ids, (B, S), 0, V)           # batch * sen_len
    last_hidden = jnp.take(embedding, token_ids, axis=0)          # (B, S, H)

    # entity masks: 0/1 floats with at least one 1 each
    e1_mask = jnp.zeros((B, S), jnp.float32).at[:, 1:3].set(1.0)
    e2_mask = jnp.zeros((B, S), jnp.float32).at[:, 4:6].set(1.0)

    params = make_params(k_params, H, L)

    # plain-JAX reference of the (unfused) head math
    cls_tok = last_hidden[:, 0, :]
    h_ref = jnp.tanh(cls_tok @ params["w_pool"] + params["b_pool"])
    x1 = jnp.einsum("bsh,bs->bh", last_hidden, e1_mask) / jnp.sum(
        e1_mask, -1, keepdims=True)
    x2 = jnp.einsum("bsh,bs->bh", last_hidden, e2_mask) / jnp.sum(
        e2_mask, -1, keepdims=True)
    concat = jnp.concatenate(
        [h_ref @ params["w_cls"] + params["b_cls"],
         x1 @ params["w_e1"] + params["b_e1"],
         x2 @ params["w_e2"] + params["b_e2"]], axis=-1)
    ref = concat @ params["w_out"] + params["b_out"]

    # f32 streaming path (tight tolerance)
    logits_f32 = rbert_forward(last_hidden, e1_mask, e2_mask, params,
                               compute_dtype=jnp.float32)
    jax.block_until_ready(logits_f32)
    assert logits_f32.shape == (B, L)
    assert jnp.allclose(logits_f32, ref, atol=1e-4, rtol=1e-4)

    # default bf16 streaming path (halves the (B,S,H) HBM read; looser tol)
    logits_bf16 = rbert_forward(last_hidden, e1_mask, e2_mask, params)
    jax.block_until_ready(logits_bf16)
    assert jnp.allclose(logits_bf16, ref, atol=5e-3, rtol=5e-2)

    print("KERNEL_OK")
</pallas_src>

<mosaic_0001>
module attributes {stable_mosaic.version = 11 : i64} {
  func.func @rbert_kernel(%arg0: i32, %arg1: i32, %arg2: memref<2x8x32xf32, #tpu.memory_space<vmem>>, %arg3: memref<2x8xf32, #tpu.memory_space<vmem>>, %arg4: memref<2x8xf32, #tpu.memory_space<vmem>>, %arg5: memref<32x32xf32, #tpu.memory_space<vmem>>, %arg6: memref<1x32xf32, #tpu.memory_space<vmem>>, %arg7: memref<32x4xf32, #tpu.memory_space<vmem>>, %arg8: memref<32x4xf32, #tpu.memory_space<vmem>>, %arg9: memref<32x4xf32, #tpu.memory_space<vmem>>, %arg10: memref<1x4xf32, #tpu.memory_space<vmem>>, %arg11: memref<2x4xf32, #tpu.memory_space<vmem>>, %arg12: memref<2x32xf32, #tpu.memory_space<vmem>>, %arg13: memref<2x32xf32, #tpu.memory_space<vmem>>, %arg14: memref<2x32xf32, #tpu.memory_space<vmem>>, %arg15: memref<2x1xf32, #tpu.memory_space<vmem>>, %arg16: memref<2x1xf32, #tpu.memory_space<vmem>>) attributes {dimension_semantics = [#tpu.dimension_semantics<parallel>, #tpu.dimension_semantics<arbitrary>], iteration_bounds = array<i64: 1, 1>, scalar_prefetch = 0 : i64, scratch_operands = 5 : i64, tpu.core_type = #tpu.core_type<tc>, window_params = [{transform_indices = @transform_0, window_bounds = array<i64: 2, 8, 32>}, {transform_indices = @transform_1, window_bounds = array<i64: 2, 8>}, {transform_indices = @transform_2, window_bounds = array<i64: 2, 8>}, {pipeline_mode = #tpu.pipeline_mode<synchronous>, transform_indices = @transform_3, window_bounds = array<i64: 32, 32>}, {pipeline_mode = #tpu.pipeline_mode<synchronous>, transform_indices = @transform_4, window_bounds = array<i64: 1, 32>}, {pipeline_mode = #tpu.pipeline_mode<synchronous>, transform_indices = @transform_5, window_bounds = array<i64: 32, 4>}, {pipeline_mode = #tpu.pipeline_mode<synchronous>, transform_indices = @transform_6, window_bounds = array<i64: 32, 4>}, {pipeline_mode = #tpu.pipeline_mode<synchronous>, transform_indices = @transform_7, window_bounds = array<i64: 32, 4>}, {pipeline_mode = #tpu.pipeline_mode<synchronous>, transform_indices = @transform_8, window_bounds = array<i64: 1, 4>}, {transform_indices = @transform_9, window_bounds = array<i64: 2, 4>}]} {
    %c0_i32 = arith.constant 0 : i32
    %0 = arith.cmpi eq, %arg1, %c0_i32 : i32
    %1 = arith.extui %0 : i1 to i32
    %c0_i32_0 = arith.constant 0 : i32
    %2 = arith.cmpi ne, %1, %c0_i32_0 : i32
    scf.if %2 {
      %cst_28 = arith.constant 0.000000e+00 : f32
      %33 = vector.broadcast %cst_28 : f32 to vector<2x32xf32>
      %c0_29 = arith.constant 0 : index
      %c0_30 = arith.constant 0 : index
      %34 = vector.load %arg13[%c0_29, %c0_30] : memref<2x32xf32, #tpu.memory_space<vmem>>, vector<2x32xf32>
      tpu.vector_store %arg13[%c0_29, %c0_30], %33 {strides = array<i32>} : memref<2x32xf32, #tpu.memory_space<vmem>>, vector<2x32xf32>,
      %cst_31 = arith.constant 0.000000e+00 : f32
      %35 = vector.broadcast %cst_31 : f32 to vector<2x32xf32>
      %c0_32 = arith.constant 0 : index
      %c0_33 = arith.constant 0 : index
      %36 = vector.load %arg14[%c0_32, %c0_33] : memref<2x32xf32, #tpu.memory_space<vmem>>, vector<2x32xf32>
      tpu.vector_store %arg14[%c0_32, %c0_33], %35 {strides = array<i32>} : memref<2x32xf32, #tpu.memory_space<vmem>>, vector<2x32xf32>,
      %cst_34 = arith.constant 0.000000e+00 : f32
      %37 = vector.broadcast %cst_34 : f32 to vector<2x1xf32>
      %c0_35 = arith.constant 0 : index
      %c0_36 = arith.constant 0 : index
      %38 = vector.load %arg15[%c0_35, %c0_36] : memref<2x1xf32, #tpu.memory_space<vmem>>, vector<2x1xf32>
      tpu.vector_store %arg15[%c0_35, %c0_36], %37 {strides = array<i32>} : memref<2x1xf32, #tpu.memory_space<vmem>>, vector<2x1xf32>,
      %cst_37 = arith.constant 0.000000e+00 : f32
      %39 = vector.broadcast %cst_37 : f32 to vector<2x1xf32>
      %c0_38 = arith.constant 0 : index
      %c0_39 = arith.constant 0 : index
      %40 = vector.load %arg16[%c0_38, %c0_39] : memref<2x1xf32, #tpu.memory_space<vmem>>, vector<2x1xf32>
      tpu.vector_store %arg16[%c0_38, %c0_39], %39 {strides = array<i32>} : memref<2x1xf32, #tpu.memory_space<vmem>>, vector<2x1xf32>,
      %c0_40 = arith.constant 0 : index
      %c0_41 = arith.constant 0 : index
      %c0_42 = arith.constant 0 : index
      %41 = vector.load %arg2[%c0_40, %c0_41, %c0_42] : memref<2x8x32xf32, #tpu.memory_space<vmem>>, vector<2x1x32xf32>
      %42 = vector.shape_cast %41 : vector<2x1x32xf32> to vector<2x32xf32>
      %c0_43 = arith.constant 0 : index
      %c0_44 = arith.constant 0 : index
      %43 = vector.load %arg12[%c0_43, %c0_44] : memref<2x32xf32, #tpu.memory_space<vmem>>, vector<2x32xf32>
      tpu.vector_store %arg12[%c0_43, %c0_44], %42 {strides = array<i32>} : memref<2x32xf32, #tpu.memory_space<vmem>>, vector<2x32xf32>,
    } else {
    }
    %c0 = arith.constant 0 : index
    %c0_1 = arith.constant 0 : index
    %c0_2 = arith.constant 0 : index
    %3 = vector.load %arg2[%c0, %c0_1, %c0_2] : memref<2x8x32xf32, #tpu.memory_space<vmem>>, vector<2x8x32xf32>
    %c0_3 = arith.constant 0 : index
    %c0_4 = arith.constant 0 : index
    %4 = vector.load %arg3[%c0_3, %c0_4] : memref<2x8xf32, #tpu.memory_space<vmem>>, vector<2x8xf32>
    %c0_5 = arith.constant 0 : index
    %c0_6 = arith.constant 0 : index
    %5 = vector.load %arg4[%c0_5, %c0_6] : memref<2x8xf32, #tpu.memory_space<vmem>>, vector<2x8xf32>
    %c0_7 = arith.constant 0 : index
    %c0_8 = arith.constant 0 : index
    %6 = vector.load %arg13[%c0_7, %c0_8] : memref<2x32xf32, #tpu.memory_space<vmem>>, vector<2x32xf32>
    %7 = vector.shape_cast %4 : vector<2x8xf32> to vector<2x8x1xf32>
    %8 = vector.broadcast %7 : vector<2x8x1xf32> to vector<2x8x32xf32>
    %9 = arith.mulf %8, %3 : vector<2x8x32xf32>
    %cst = arith.constant dense<0.000000e+00> : vector<2x32xf32>
    %10 = vector.multi_reduction <add>, %9, %cst [1] : vector<2x8x32xf32> to vector<2x32xf32>
    %11 = arith.addf %6, %10 : vector<2x32xf32>
    %c0_9 = arith.constant 0 : index
    %c0_10 = arith.constant 0 : index
    %12 = vector.load %arg13[%c0_9, %c0_10] : memref<2x32xf32, #tpu.memory_space<vmem>>, vector<2x32xf32>
    tpu.vector_store %arg13[%c0_9, %c0_10], %11 {strides = array<i32>} : memref<2x32xf32, #tpu.memory_space<vmem>>, vector<2x32xf32>,
    %c0_11 = arith.constant 0 : index
    %c0_12 = arith.constant 0 : index
    %13 = vector.load %arg14[%c0_11, %c0_12] : memref<2x32xf32, #tpu.memory_space<vmem>>, vector<2x32xf32>
    %14 = vector.shape_cast %5 : vector<2x8xf32> to vector<2x8x1xf32>
    %15 = vector.broadcast %14 : vector<2x8x1xf32> to vector<2x8x32xf32>
    %16 = arith.mulf %15, %3 : vector<2x8x32xf32>
    %cst_13 = arith.constant dense<0.000000e+00> : vector<2x32xf32>
    %17 = vector.multi_reduction <add>, %16, %cst_13 [1] : vector<2x8x32xf32> to vector<2x32xf32>
    %18 = arith.addf %13, %17 : vector<2x32xf32>
    %c0_14 = arith.constant 0 : index
    %c0_15 = arith.constant 0 : index
    %19 = vector.load %arg14[%c0_14, %c0_15] : memref<2x32xf32, #tpu.memory_space<vmem>>, vector<2x32xf32>
    tpu.vector_store %arg14[%c0_14, %c0_15], %18 {strides = array<i32>} : memref<2x32xf32, #tpu.memory_space<vmem>>, vector<2x32xf32>,
    %c0_16 = arith.constant 0 : index
    %c0_17 = arith.constant 0 : index
    %20 = vector.load %arg15[%c0_16, %c0_17] : memref<2x1xf32, #tpu.memory_space<vmem>>, vector<2x1xf32>
    %cst_18 = arith.constant dense<0.000000e+00> : vector<2xf32>
    %21 = vector.multi_reduction <add>, %4, %cst_18 [1] : vector<2x8xf32> to vector<2xf32>
    %22 = vector.shape_cast %21 : vector<2xf32> to vector<2x1xf32>
    %23 = arith.addf %20, %22 : vector<2x1xf32>
    %c0_19 = arith.constant 0 : index
    %c0_20 = arith.constant 0 : index
    %24 = vector.load %arg15[%c0_19, %c0_20] : memref<2x1xf32, #tpu.memory_space<vmem>>, vector<2x1xf32>
    tpu.vector_store %arg15[%c0_19, %c0_20], %23 {strides = array<i32>} : memref<2x1xf32, #tpu.memory_space<vmem>>, vector<2x1xf32>,
    %c0_21 = arith.constant 0 : index
    %c0_22 = arith.constant 0 : index
    %25 = vector.load %arg16[%c0_21, %c0_22] : memref<2x1xf32, #tpu.memory_space<vmem>>, vector<2x1xf32>
    %cst_23 = arith.constant dense<0.000000e+00> : vector<2xf32>
    %26 = vector.multi_reduction <add>, %5, %cst_23 [1] : vector<2x8xf32> to vector<2xf32>
    %27 = vector.shape_cast %26 : vector<2xf32> to vector<2x1xf32>
    %28 = arith.addf %25, %27 : vector<2x1xf32>
    %c0_24 = arith.constant 0 : index
    %c0_25 = arith.constant 0 : index
    %29 = vector.load %arg16[%c0_24, %c0_25] : memref<2x1xf32, #tpu.memory_space<vmem>>, vector<2x1xf32>
    tpu.vector_store %arg16[%c0_24, %c0_25], %28 {strides = array<i32>} : memref<2x1xf32, #tpu.memory_space<vmem>>, vector<2x1xf32>,
    %c0_i32_26 = arith.constant 0 : i32
    %30 = arith.cmpi eq, %arg1, %c0_i32_26 : i32
    %31 = arith.extui %30 : i1 to i32
    %c0_i32_27 = arith.constant 0 : i32
    %32 = arith.cmpi ne, %31, %c0_i32_27 : i32
    scf.if %32 {
      %c0_28 = arith.constant 0 : index
      %c0_29 = arith.constant 0 : index
      %33 = vector.load %arg13[%c0_28, %c0_29] : memref<2x32xf32, #tpu.memory_space<vmem>>, vector<2x32xf32>
      %c0_30 = arith.constant 0 : index
      %c0_31 = arith.constant 0 : index
      %34 = vector.load %arg15[%c0_30, %c0_31] : memref<2x1xf32, #tpu.memory_space<vmem>>, vector<2x1xf32>
      %35 = tpu.reciprocal %34 : vector<2x1xf32> -> vector<2x1xf32>
      %36 = vector.broadcast %35 : vector<2x1xf32> to vector<2x32xf32>
      %37 = arith.mulf %33, %36 : vector<2x32xf32>
      %c0_32 = arith.constant 0 : index
      %c0_33 = arith.constant 0 : index
      %38 = vector.load %arg14[%c0_32, %c0_33] : memref<2x32xf32, #tpu.memory_space<vmem>>, vector<2x32xf32>
      %c0_34 = arith.constant 0 : index
      %c0_35 = arith.constant 0 : index
      %39 = vector.load %arg16[%c0_34, %c0_35] : memref<2x1xf32, #tpu.memory_space<vmem>>, vector<2x1xf32>
      %40 = tpu.reciprocal %39 : vector<2x1xf32> -> vector<2x1xf32>
      %41 = vector.broadcast %40 : vector<2x1xf32> to vector<2x32xf32>
      %42 = arith.mulf %38, %41 : vector<2x32xf32>
      %c0_36 = arith.constant 0 : index
      %c0_37 = arith.constant 0 : index
      %43 = vector.load %arg12[%c0_36, %c0_37] : memref<2x32xf32, #tpu.memory_space<vmem>>, vector<2x32xf32>
      %c0_38 = arith.constant 0 : index
      %c0_39 = arith.constant 0 : index
      %44 = vector.load %arg5[%c0_38, %c0_39] : memref<32x32xf32, #tpu.memory_space<vmem>>, vector<32x32xf32>
      %cst_40 = arith.constant dense<0.000000e+00> : vector<2x32xf32>
      %45 = tpu.matmul %43, %44, %cst_40 {dimension_numbers = #tpu.dot_dimension_numbers<[1], [0], [0], [1], [0, 0, 1, 1], [], []>} : vector<2x32xf32>, vector<32x32xf32>, vector<2x32xf32> -> vector<2x32xf32>
      %c0_41 = arith.constant 0 : index
      %c0_42 = arith.constant 0 : index
      %46 = vector.load %arg6[%c0_41, %c0_42] : memref<1x32xf32, #tpu.memory_space<vmem>>, vector<1x32xf32>
      %47 = vector.broadcast %46 : vector<1x32xf32> to vector<2x32xf32>
      %48 = arith.addf %45, %47 : vector<2x32xf32>
      %49 = math.tanh %48 : vector<2x32xf32>
      %c0_43 = arith.constant 0 : index
      %c0_44 = arith.constant 0 : index
      %50 = vector.load %arg7[%c0_43, %c0_44] : memref<32x4xf32, #tpu.memory_space<vmem>>, vector<32x4xf32>
      %cst_45 = arith.constant dense<0.000000e+00> : vector<2x4xf32>
      %51 = tpu.matmul %49, %50, %cst_45 {dimension_numbers = #tpu.dot_dimension_numbers<[1], [0], [0], [1], [0, 0, 1, 1], [], []>} : vector<2x32xf32>, vector<32x4xf32>, vector<2x4xf32> -> vector<2x4xf32>
      %c0_46 = arith.constant 0 : index
      %c0_47 = arith.constant 0 : index
      %52 = vector.load %arg8[%c0_46, %c0_47] : memref<32x4xf32, #tpu.memory_space<vmem>>, vector<32x4xf32>
      %cst_48 = arith.constant dense<0.000000e+00> : vector<2x4xf32>
      %53 = tpu.matmul %37, %52, %cst_48 {dimension_numbers = #tpu.dot_dimension_numbers<[1], [0], [0], [1], [0, 0, 1, 1], [], []>} : vector<2x32xf32>, vector<32x4xf32>, vector<2x4xf32> -> vector<2x4xf32>
      %54 = arith.addf %51, %53 : vector<2x4xf32>
      %c0_49 = arith.constant 0 : index
      %c0_50 = arith.constant 0 : index
      %55 = vector.load %arg9[%c0_49, %c0_50] : memref<32x4xf32, #tpu.memory_space<vmem>>, vector<32x4xf32>
      %cst_51 = arith.constant dense<0.000000e+00> : vector<2x4xf32>
      %56 = tpu.matmul %42, %55, %cst_51 {dimension_numbers = #tpu.dot_dimension_numbers<[1], [0], [0], [1], [0, 0, 1, 1], [], []>} : vector<2x32xf32>, vector<32x4xf32>, vector<2x4xf32> -> vector<2x4xf32>
      %57 = arith.addf %54, %56 : vector<2x4xf32>
      %c0_52 = arith.constant 0 : index
      %c0_53 = arith.constant 0 : index
      %58 = vector.load %arg10[%c0_52, %c0_53] : memref<1x4xf32, #tpu.memory_space<vmem>>, vector<1x4xf32>
      %59 = vector.broadcast %58 : vector<1x4xf32> to vector<2x4xf32>
      %60 = arith.addf %57, %59 : vector<2x4xf32>
      %c0_54 = arith.constant 0 : index
      %c0_55 = arith.constant 0 : index
      %61 = vector.load %arg11[%c0_54, %c0_55] : memref<2x4xf32, #tpu.memory_space<vmem>>, vector<2x4xf32>
      tpu.vector_store %arg11[%c0_54, %c0_55], %60 {strides = array<i32>} : memref<2x4xf32, #tpu.memory_space<vmem>>, vector<2x4xf32>,
    } else {
    }
    return
  }
  func.func @transform_0(%arg0: i32, %arg1: i32) -> (i32, i32, i32) {
    %c0_i32 = arith.constant 0 : i32
    %c0_i32_0 = arith.constant 0 : i32
    return %arg0, %arg1, %c0_i32 : i32, i32, i32
  }
  func.func @transform_1(%arg0: i32, %arg1: i32) -> (i32, i32) {
    %c0_i32 = arith.constant 0 : i32
    return %arg0, %arg1 : i32, i32
  }
  func.func @transform_2(%arg0: i32, %arg1: i32) -> (i32, i32) {
    %c0_i32 = arith.constant 0 : i32
    return %arg0, %arg1 : i32, i32
  }
  func.func @transform_3(%arg0: i32, %arg1: i32) -> (i32, i32) {
    %c0_i32 = arith.constant 0 : i32
    %c0_i32_0 = arith.constant 0 : i32
    %c0_i32_1 = arith.constant 0 : i32
    return %c0_i32, %c0_i32_0 : i32, i32
  }
  func.func @transform_4(%arg0: i32, %arg1: i32) -> (i32, i32) {
    %c0_i32 = arith.constant 0 : i32
    %c0_i32_0 = arith.constant 0 : i32
    %c0_i32_1 = arith.constant 0 : i32
    return %c0_i32, %c0_i32_0 : i32, i32
  }
  func.func @transform_5(%arg0: i32, %arg1: i32) -> (i32, i32) {
    %c0_i32 = arith.constant 0 : i32
    %c0_i32_0 = arith.constant 0 : i32
    %c0_i32_1 = arith.constant 0 : i32
    return %c0_i32, %c0_i32_0 : i32, i32
  }
  func.func @transform_6(%arg0: i32, %arg1: i32) -> (i32, i32) {
    %c0_i32 = arith.constant 0 : i32
    %c0_i32_0 = arith.constant 0 : i32
    %c0_i32_1 = arith.constant 0 : i32
    return %c0_i32, %c0_i32_0 : i32, i32
  }
  func.func @transform_7(%arg0: i32, %arg1: i32) -> (i32, i32) {
    %c0_i32 = arith.constant 0 : i32
    %c0_i32_0 = arith.constant 0 : i32
    %c0_i32_1 = arith.constant 0 : i32
    return %c0_i32, %c0_i32_0 : i32, i32
  }
  func.func @transform_8(%arg0: i32, %arg1: i32) -> (i32, i32) {
    %c0_i32 = arith.constant 0 : i32
    %c0_i32_0 = arith.constant 0 : i32
    %c0_i32_1 = arith.constant 0 : i32
    return %c0_i32, %c0_i32_0 : i32, i32
  }
  func.func @transform_9(%arg0: i32, %arg1: i32) -> (i32, i32) {
    %c0_i32 = arith.constant 0 : i32
    %c0_i32_0 = arith.constant 0 : i32
    return %arg0, %c0_i32 : i32, i32
  }
}

</mosaic_0001>

<bundles_post_ra>
// kernel: tpu_custom_call.1
= control target key start
LH: loop header
LB: loop body
LE: loop exit
PB: predicated region body
PF: predicated region fallthrough
CT: control target
= control target key end

     0   :  { %vm134_vm0 = vcmask 58368   ;;  %v58_v1 = vlaneseq  ;;  %s525_s0 = inlined_call_operand.vmem [shape: f32[2,8,32], index: 0, kind: input, shape index: {}]   ;;  %s526_s1 = inlined_call_operand.vmem [shape: f32[2,8], index: 1, kind: input, shape index: {}]   ;;  %s527_s2 = inlined_call_operand.vmem [shape: f32[2,8], index: 2, kind: input, shape index: {}]   ;;  %s528_s3 = inlined_call_operand.vmem [shape: f32[32,32], index: 3, kind: input, shape index: {}]   ;;  %s529_s4 = inlined_call_operand.vmem [shape: f32[1,32], index: 4, kind: input, shape index: {}]   ;;  %s530_s5 = inlined_call_operand.vmem [shape: f32[32,4], index: 5, kind: input, shape index: {}]   ;;  %s531_s6 = inlined_call_operand.vmem [shape: f32[32,4], index: 6, kind: input, shape index: {}]   ;;  %s532_s7 = inlined_call_operand.vmem [shape: f32[32,4], index: 7, kind: input, shape index: {}]   ;;  %s533_s8 = inlined_call_operand.vmem [shape: f32[1,4], index: 8, kind: input, shape index: {}]   ;;  %s534_s9 = inlined_call_operand.hbm [shape: f32[2,4], index: 9, kind: output, shape index: {}]  }
   0x1   :  { %v55_v0 = vld [vmem:[%s527_s2] sm:$0x3] }
   0x2   :  { %v142_v2 = vsel %vm134_vm0, %v55_v0, 0.0  ;;  %v59_v3 = vshrl.u32 %v58_v1, 7 }
   0x3   :  { %143 = vadd.xlane.f32.xlu0 %v142_v2 }
   0x4   :  { %14 = vsyncpa [#allocation8], 0  ;;  %v54_v4 = vld [vmem:[%s526_s1] sm:$0x3]  ;;  %339 = vset.pattern.permute.xlu1 %v59_v3  ;;  %340 = vset.pattern.permute.xlu2 %v59_v3  ;;  %v97_v6 = vperm.slane %v55_v0, 0  ;;  %v104_v7 = vperm.slane %v55_v0, 1 }
   0x5   :  { %v135_v5 = vsel %vm134_vm0, %v54_v4, 0.0  ;;  %vm40_vm1 = vcmask 1024   ;;  %v377_v8 = vmov 0.0   ;;  %vm37_vm2 = vcmask 254976   ;;  %v43_v9 = vld [vmem:[%s525_s0] sm:$0x1] }
   0x6   :  { %42 = vst.msk [vmem:[#allocation6] sm:$0x3] %vm40_vm1, %v377_v8  ;;  %v44_v10 = vld [vmem:[%s525_s0 + $0x8] sm:$0x1]  ;;  %vm48_vm3 = vcmask 1041409   ;;  %v198_v13 = vld [vmem:[%s528_s3 + $0x18] sm:$0xff] }
   0x7   :  { %41 = vst.msk [vmem:[#allocation5] sm:$0x3] %vm40_vm1, %v377_v8  ;;  %v47_v11 = vrot.slane %v44_v10, 7  ;;  %v197_v14 = vld [vmem:[%s528_s3 + $0x10] sm:$0xff]  ;;  %218 = vmatpush.msra.mxu0 %v198_v13  ;;  %v196_v15 = vld [vmem:[%s528_s3 + $0x8] sm:$0xff]  ;;  %v195_v16 = vld [vmem:[%s528_s3] sm:$0xff] }
   0x8   :  { %38 = vst.msk [vmem:[#allocation3] sm:$0x3] %vm37_vm2, %v377_v8  ;;  %v57_v17 = vperm.slane %v54_v4, 0  ;;  %vm73_vm4 = vcmask 261120   ;;  %v378_v19 = vmov 0   ;;  %v64_v20 = vperm.slane %v54_v4, 1 }
   0x9   :  { %39 = vst.msk [vmem:[#allocation4] sm:$0x3] %vm37_vm2, %v377_v8  ;;  %v49_v12 = vsel %vm48_vm3, %v47_v11, %v43_v9  ;;  %219 = vmatpush.msra.mxu0 %v197_v14  ;;  %341 = vset.pattern.permute.xlu0 %v378_v19  ;;  %v52_v48 = vld [vmem:[%s525_s0] sm:$0xff]  ;;  %v53_v57 = vld [vmem:[%s525_s0 + $0x8] sm:$0xff]  ;;  %v284_v13 = vld [vmem:[%s532_s7 + $0x18] sm:$0xff]  ;;  %s323_s28 = sshll.u32 %s534_s9, 4  ;;  %s324_s28 = int_to_ptr.hbm [resolvable:$true] %s323_s28 }
   0xa   :  { %51 = vst.msk [vmem:[#allocation2] sm:$0x3] %vm37_vm2, %v49_v12  ;;  %v230_v14 = vld [vmem:[%s530_s5 + $0x18] sm:$0xff]  ;;  %300 = vmatpush.msra.mxu3 %v284_v13  ;;  %vm314_vm13 = vcmask 25600  }
   0xb   :  { %136 = vadd.xlane.f32.xlu0 %v135_v5  ;;  %220 = vmatpush.msra.mxu0 %v196_v15  ;;  %v283_v15 = vld [vmem:[%s532_s7 + $0x10] sm:$0xff] }
   0xc   :  { %102 = vperm.xlu1 %339, %v97_v6   ;;  %62 = vperm.xlu2 %340, %v57_v17  }
   0xd   :  { %221 = vmatpush.msra.mxu0 %v195_v16  ;;  %v141_v21 = vld [vmem:[#allocation6] sm:$0x3]  ;;  %273 = vmatpush.msra.mxu2 %v230_v14  ;;  %v229_v16 = vld [vmem:[%s530_s5 + $0x10] sm:$0xff] }
   0xe   :  { %v133_v24 = vld [vmem:[#allocation5] sm:$0x3]  ;;  %301 = vmatpush.msra.mxu3 %v283_v15 }
   0xf   :  { %274 = vmatpush.msra.mxu2 %v229_v16 }
  0x10   :  { %v96_v4 = vld [vmem:[#allocation4] sm:$0x3] }
  0x11   :  { %v194_v18 = vld [vmem:[#allocation2] sm:$0x3] }
  0x12   :  { %332 = vmatmul.msk.f32.vlgmr.msra.gmra.mxu0 %vm73_vm4, %v194_v18 }
  0x14   :  { %109 = vperm.xlu1 %339, %v104_v7   ;;  %69 = vperm.xlu2 %340, %v64_v20  }
  0x1c   :  { %342 = vset.pattern.permute.xlu1 %v378_v19  ;;  %v282_v19 = vld [vmem:[%s532_s7 + $0x8] sm:$0xff] }
  0x1d   :  { %302 = vmatpush.msra.mxu3 %v282_v19 }
  0x66   :  { %v63_v8 = vpop.permute.xlu2 %62 }
  0x67   :  { %v71_v9 = vmul.f32 %v63_v8, %v52_v48 }
  0x69   :  { %v74_v10 = vsel %vm73_vm4, %v71_v9, 0.0 }
  0x6a   :  { %v75_v11 = vrot.slane %v74_v10, 4 }
  0x6c   :  { %v76_v12 = vadd.f32 %v75_v11, %v74_v10 }
  0x6e   :  { %v77_v17 = vrot.slane %v76_v12, 2  ;;  %v70_v18 = vpop.permute.xlu2 %69 }
  0x6f   :  { %v72_v20 = vmul.f32 %v70_v18, %v53_v57 }
  0x76   :  { %v144_v22 = vpop.xlane.xlu0 %143 }
  0x77   :  { %v145_v23 = vadd.f32 %v144_v22, %v141_v21  ;;  %v81_v21 = vsel %vm73_vm4, %v72_v20, 0.0  ;;  %v78_v22 = vadd.f32 %v77_v17, %v76_v12 }
  0x79   :  { %146 = vst.msk [vmem:[#allocation6] sm:$0x3] %vm40_vm1, %v145_v23  ;;  %v82_v23 = vrot.slane %v81_v21, 4 }
  0x7e   :  { %v137_v25 = vpop.xlane.xlu0 %136  ;;  %v103_v50 = vpop.permute.xlu1 %102 }
  0x7f   :  { %v138_v26 = vadd.f32 %v137_v25, %v133_v24  ;;  %v111_v51 = vmul.f32 %v103_v50, %v52_v48  ;;  %v83_v24 = vadd.f32 %v82_v23, %v81_v21  ;;  %v79_v25 = vrot.slane %v78_v22, 1 }
  0x80   :  { %v173_v27 = vld [vmem:[#allocation6] sm:$0x3] }
  0x81   :  { %140 = vst.msk [vmem:[#allocation5] sm:$0x3] %vm40_vm1, %v138_v26  ;;  %345 = vrcp.f32 %v173_v27  ;;  %v185_v32 = vand.u32 2147483648, %v173_v27  ;;  %v183_v34 = vand.u32 2147483647, %v173_v27  ;;  %vm179_vm6 = vweird.f32 %v173_v27 }
  0x82   :  { %v113_v52 = vsel %vm73_vm4, %v111_v51, 0.0  ;;  %v84_v26 = vrot.slane %v83_v24, 2 }
  0x83   :  { %v186_v37 = vor.u32 1.1754944e-38, %v185_v32  ;;  %vm184_vm8 = vcmp.eq.f32.partialorder %v183_v34, 8.507059e+37  ;;  %v114_v53 = vrot.slane %v113_v52, 4  ;;  %v343_v34 = vld [vmem:[%s529_s4] ss:$0 sm:$0xff] }
  0x85   :  { %v115_v54 = vadd.f32 %v114_v53, %v113_v52 }
  0x86   :  { %v110_v56 = vpop.permute.xlu1 %109 }
  0x87   :  { %v346_v28 = vpop.eup %345  ;;  %v116_v55 = vrot.slane %v115_v54, 2  ;;  %v112_v58 = vmul.f32 %v110_v56, %v53_v57 }
  0x88   :  { %v175_v29 = vmul.f32 %v346_v28, %v173_v27  ;;  %v151_v30 = vld [vmem:[#allocation5] sm:$0x3]  ;;  %vm180_vm5 = vweird.f32 %v346_v28  ;;  %v85_v27 = vadd.f32 %v84_v26, %v83_v24 }
  0x89   :  { %347 = vrcp.f32 %v151_v30  ;;  %vm181_vm7 = vmor %vm179_vm6, %vm180_vm5  ;;  %v163_v42 = vand.u32 2147483648, %v151_v30  ;;  %v161_v44 = vand.u32 2147483647, %v151_v30  ;;  %vm157_vm10 = vweird.f32 %v151_v30 }
  0x8a   :  { %v176_v31 = vsub.f32 1.0, %v175_v29  ;;  %v120_v59 = vsel %vm73_vm4, %v112_v58, 0.0  ;;  %v117_v60 = vadd.f32 %v116_v55, %v115_v54  ;;  %v86_v29 = vrot.slane %v85_v27, 1  ;;  %v344_v54 = vld [vmem:[%s533_s8] ss:$0 sm:$0xff] }
  0x8b   :  { %v164_v46 = vor.u32 1.1754944e-38, %v163_v42  ;;  %vm162_vm12 = vcmp.eq.f32.partialorder %v161_v44, 8.507059e+37  ;;  %v121_v61 = vrot.slane %v120_v59, 4  ;;  %v231_v44 = vld [vmem:[%s531_s6] sm:$0xff] }
  0x8c   :  { %v177_v33 = vmul.f32 %v346_v28, %v176_v31  ;;  %v118_v63 = vrot.slane %v117_v60, 1  ;;  %v87_v31 = vadd.f32 %v86_v29, %v85_v27 }
  0x8d   :  { %v122_v62 = vadd.f32 %v121_v61, %v120_v59 }
  0x8e   :  { %v178_v35 = vadd.f32 %v346_v28, %v177_v33  ;;  %v119_v2 = vadd.f32 %v118_v63, %v117_v60 }
  0x8f   :  { %v348_v36 = vpop.eup %347  ;;  %v123_v0 = vrot.slane %v122_v62, 2 }
  0x90   :  { %v182_v38 = vsel %vm181_vm7, %v346_v28, %v178_v35  ;;  %v153_v39 = vmul.f32 %v348_v36, %v151_v30  ;;  %vm158_vm9 = vweird.f32 %v348_v36  ;;  %v80_v28 = vadd.f32 %v79_v25, %v78_v22  ;;  %v56_v30 = vld [vmem:[#allocation3] sm:$0x3]  ;;  %v223_v35 = vpop.f32.mrf.mxu0 }
  0x91   :  { %v187_v40 = vsel %vm184_vm8, %v186_v37, %v182_v38  ;;  %vm159_vm11 = vmor %vm157_vm10, %vm158_vm9  ;;  %v124_v1 = vadd.f32 %v123_v0, %v122_v62  ;;  %v228_v37 = vld [vmem:[%s530_s5 + $0x8] sm:$0xff]  ;;  %v281_v38 = vld [vmem:[%s532_s7] sm:$0xff] }
  0x92   :  { %190 = vperm.xlu0 %341, %v187_v40   ;;  %v154_v41 = vsub.f32 1.0, %v153_v39  ;;  %v91_v32 = vsel %vm48_vm3, %v87_v31, %v80_v28  ;;  %275 = vmatpush.msra.mxu2 %v228_v37  ;;  %v234_v39 = vld [vmem:[%s531_s6 + $0x18] sm:$0xff]  ;;  %v227_v40 = vld [vmem:[%s530_s5] sm:$0xff] }
  0x93   :  { %v125_v3 = vrot.slane %v124_v1, 1  ;;  %v93_v33 = vadd.f32 %v91_v32, %v56_v30  ;;  %303 = vmatpush.msra.mxu3 %v281_v38  ;;  %250 = vmatpush.msra.mxu1 %v234_v39 }
  0x94   :  { %v155_v43 = vmul.f32 %v348_v36, %v154_v41  ;;  %v233_v41 = vld [vmem:[%s531_s6 + $0x10] sm:$0xff]  ;;  %276 = vmatpush.msra.mxu2 %v227_v40 }
  0x95   :  { %v126_v5 = vadd.f32 %v125_v3, %v124_v1  ;;  %95 = vst.msk [vmem:[#allocation3] sm:$0x3] %vm37_vm2, %v93_v33  ;;  %251 = vmatpush.msra.mxu1 %v233_v41 }
  0x96   :  { %v156_v45 = vadd.f32 %v348_v36, %v155_v43  ;;  %v232_v43 = vld [vmem:[%s531_s6 + $0x8] sm:$0xff]  ;;  %s379_s6 = smov [#allocation7]  }
  0x97   :  { %v129_v6 = vsel %vm48_vm3, %v126_v5, %v119_v2  ;;  %252 = vmatpush.msra.mxu1 %v232_v43  ;;  %s321_s0 = sshll.u32 %s379_s6, 4  ;;  %s322_s0 = int_to_ptr.vmem [resolvable:$true] %s321_s0 }
  0x98   :  { %v160_v47 = vsel %vm159_vm11, %v348_v36, %v156_v45  ;;  %v131_v7 = vadd.f32 %v129_v6, %v96_v4  ;;  %v224_v36 = vadd.f32 %v343_v34, %v223_v35 }
  0x99   :  { %v165_v49 = vsel %vm162_vm12, %v164_v46, %v160_v47  ;;  %253 = vmatpush.msra.mxu1 %v231_v44 }
  0x9a   :  { %168 = vperm.xlu1 %342, %v165_v49   ;;  %132 = vst.msk [vmem:[#allocation4] sm:$0x3] %vm37_vm2, %v131_v7  ;;  %349 = vtanh.f32 %v224_v36 }
  0x9c   :  { %v150_v49 = vld [vmem:[#allocation3] sm:$0x3] }
  0xa0   :  { %v350_v42 = vpop.eup %349 }
  0xa1   :  { %334 = vmatmul.msk.f32.vlgmr.msra.gmra.mxu2 %vm73_vm4, %v350_v42  ;;  %v172_v46 = vld [vmem:[#allocation4] sm:$0x3] }
 0x104   :  { %v191_v45 = vpop.permute.xlu0 %190 }
 0x105   :  { %v193_v47 = vmul.f32 %v191_v45, %v172_v46 }
 0x107   :  { %335 = vmatmul.msk.f32.vlgmr.msra.gmra.mxu3 %vm73_vm4, %v193_v47 }
 0x10c   :  { %v169_v48 = vpop.permute.xlu1 %168 }
 0x10d   :  { %v171_v50 = vmul.f32 %v169_v48, %v150_v49 }
 0x10f   :  { %333 = vmatmul.msk.f32.vlgmr.msra.gmra.mxu1 %vm73_vm4, %v171_v50 }
 0x124   :  { %v278_v51 = vpop.f32.mrf.mxu2 }
 0x18a   :  { %v305_v55 = vpop.f32.mrf.mxu3 }
 0x18c   :  { %v255_v52 = vpop.f32.mrf.mxu1 }
 0x18d   :  { %v279_v53 = vadd.f32 %v278_v51, %v255_v52 }
 0x18f   :  { %v308_v56 = vadd.f32 %v305_v55, %v279_v53 }
 0x191   :  { %v313_v57 = vadd.f32 %v344_v54, %v308_v56 }
 0x193   :  { %315 = vst.msk [vmem:[#allocation7] sm:$0x3] %vm314_vm13, %v313_v57 }
 0x194   :  { %326 = dma.vmem_to_hbm [thread:$0]  %s322_s0, 32, %s324_s28, [#allocation8]  }
 0x195   :  { %375 = dma.done.wait [#allocation8], 32  }
 0x196   :  { %376 = vsyncadd [#allocation8], 4294967264 }
 0x197   :  { %331 = vsyncpa [#allocation8], 1 }

</bundles_post_ra>
